<compile_context>
chip_gen: v7x
topology: tpu7x:2x2x1
jax: 0.10.0
libtpu: 0.0.40
codegen_flags: <defaults>
</compile_context>

<pallas_src>
import functools

import jax
import jax.numpy as jnp
from jax.experimental import pallas as pl
from jax.experimental.pallas import tpu as pltpu

LANE = 128
SUBLANE = 8
MIN_TILE = LANE * SUBLANE  # 1024 elements: smallest tile keeping (8,128) alignment


def _round_up(a, m):
    return ((a + m - 1) // m) * m


# Flat SMEM parameter layout (13 f32 scalars):
#   p[0:6]  = w1 (3,2) row-major  -> p[2*j + k] = w1[j, k]
#   p[6:9]  = b1 (3,)
#   p[9:12] = w2 (1,3)            -> p[9 + j]   = w2[0, j]
#   p[12]   = b2
def simplenet_kernel(p_ref, x_ref, o_ref):
    # x_ref: (2, rt, 128) -- batch dense over sublanes AND lanes.
    x0 = x_ref[0]                  # (rt, 128) full-density f32 vregs
    x1 = x_ref[1]                  # (rt, 128)

    # fc1 + ReLU + fc2 as plain VPU FMAs (weights read as SMEM scalars).
    acc = None
    for j in range(3):
        h = x0 * p_ref[2 * j] + x1 * p_ref[2 * j + 1] + p_ref[6 + j]
        h = jnp.maximum(h, 0.0)                     # ReLU
        c = h * p_ref[9 + j]
        acc = c if acc is None else acc + c

    o_ref[...] = (acc + p_ref[12]).astype(o_ref.dtype)   # (rt, 128) dense store


@functools.partial(jax.jit, static_argnames=("block_b",))
def simplenet_forward(x, w1, b1, w2, b2, *, block_b=512 * 1024):
    """x: (B, 2) f32. w1: (3, 2), b1: (3,), w2: (1, 3), b2: (1,) -- PyTorch layout."""
    B = x.shape[0]
    block_b = max(_round_up(block_b, MIN_TILE), MIN_TILE)

    b_ceil = _round_up(B, MIN_TILE)
    tb = min(block_b, b_ceil)
    # v7x: if a single tile would cover the whole batch but it splits evenly,
    # use two balanced grid steps so both TensorCores get work (no-op on v5e/v6e).
    if tb == b_ceil and b_ceil % (2 * MIN_TILE) == 0:
        tb = b_ceil // 2
    b_pad = _round_up(B, tb)
    rows = b_pad // LANE           # total sublane rows
    rt = tb // LANE                # rows per tile (multiple of 8)

    # Feature-major, pad, densify batch over (sublane, lane). Under jit the
    # transpose + pad + reshape fuse into one producer pass.
    xt = x.T                                            # (2, B)
    if b_pad != B:
        xt = jnp.pad(xt, ((0, 0), (0, b_pad - B)))      # zero lanes, sliced off later
    xt = xt.reshape(2, rows, LANE)

    # All 13 parameters in one flat vector -> single SMEM-resident input.
    params = jnp.concatenate(
        [w1.reshape(-1), b1.reshape(-1), w2.reshape(-1), b2.reshape(-1)]
    ).astype(jnp.float32)

    # Double-buffered VMEM budget: x = 8 B/elt, out = 4 B/elt, x2 buffers each.
    vmem_need = 2 * (2 * tb * 4 + tb * 4) + (1 << 16)
    vmem_limit = max(vmem_need, 16 * 1024 * 1024)

    out = pl.pallas_call(
        simplenet_kernel,
        out_shape=jax.ShapeDtypeStruct((rows, LANE), x.dtype),
        grid=(b_pad // tb,),
        in_specs=[
            pl.BlockSpec(memory_space=pltpu.MemorySpace.SMEM),    # packed params
            pl.BlockSpec((2, rt, LANE), lambda i: (0, i, 0)),     # x tile, lane+sublane dense
        ],
        out_specs=pl.BlockSpec((rt, LANE), lambda i: (i, 0)),
        compiler_params=pltpu.CompilerParams(
            dimension_semantics=("parallel",),                    # v7x: shard grid over 2 TCs
            vmem_limit_bytes=vmem_limit,
        ),
        cost_estimate=pl.CostEstimate(
            flops=21 * b_pad, transcendentals=0,
            bytes_accessed=12 * b_pad + 52),
    )(params, xt)

    return out.reshape(-1)[:B].reshape(B, 1)                      # back to PyTorch's (B, 1)


def init_params(key):
    """Deterministic init mimicking nn.Linear's uniform(-1/sqrt(fan_in), 1/sqrt(fan_in))."""
    k1, k2, k3, k4 = jax.random.split(key, 4)
    bound1 = 1.0 / jnp.sqrt(2.0)   # fc1: in_features = 2
    bound2 = 1.0 / jnp.sqrt(3.0)   # fc2: in_features = 3
    w1 = jax.random.uniform(k1, (3, 2), jnp.float32, -bound1, bound1)
    b1 = jax.random.uniform(k2, (3,), jnp.float32, -bound1, bound1)
    w2 = jax.random.uniform(k3, (1, 3), jnp.float32, -bound2, bound2)
    b2 = jax.random.uniform(k4, (1,), jnp.float32, -bound2, bound2)
    return w1, b1, w2, b2


def _reference(x, w1, b1, w2, b2):
    return jnp.maximum(x @ w1.T + b1, 0.0) @ w2.T + b2


if __name__ == "__main__":
    key = jax.random.PRNGKey(0)
    k_x, k_p = jax.random.split(key)
    w1, b1, w2, b2 = init_params(k_p)

    # Small shape matching the module (batch=8, in_features=2), single tile.
    x_small = jax.random.normal(k_x, (8, 2), jnp.float32)
    out_small = jax.block_until_ready(simplenet_forward(x_small, w1, b1, w2, b2))
    assert out_small.shape == (8, 1)
    assert jnp.allclose(out_small, _reference(x_small, w1, b1, w2, b2), atol=1e-5, rtol=1e-5)

    # Multi-tile + ragged tail: B not a multiple of 128 and B > block_b (grid = 3).
    x_rag = jax.random.normal(k_x, (2500, 2), jnp.float32)
    out_rag = jax.block_until_ready(
        simplenet_forward(x_rag, w1, b1, w2, b2, block_b=1024))
    assert out_rag.shape == (2500, 1)
    assert jnp.allclose(out_rag, _reference(x_rag, w1, b1, w2, b2), atol=1e-5, rtol=1e-5)

    # Even-grid split path (single block would fit; split into 2 tiles for v7x).
    x_even = jax.random.normal(k_x, (2048, 2), jnp.float32)
    out_even = jax.block_until_ready(simplenet_forward(x_even, w1, b1, w2, b2))
    assert out_even.shape == (2048, 1)
    assert jnp.allclose(out_even, _reference(x_even, w1, b1, w2, b2), atol=1e-5, rtol=1e-5)

    print("KERNEL_OK")
</pallas_src>

<mosaic_0001>
module attributes {stable_mosaic.version = 11 : i64} {
  func.func @simplenet_kernel(%arg0: i32, %arg1: memref<13xf32, #tpu.memory_space<smem>>, %arg2: memref<2x8x128xf32, #tpu.memory_space<vmem>>, %arg3: memref<8x128xf32, #tpu.memory_space<vmem>>) attributes {dimension_semantics = [#tpu.dimension_semantics<parallel>], iteration_bounds = array<i64: 1>, scalar_prefetch = 0 : i64, scratch_operands = 0 : i64, tpu.core_type = #tpu.core_type<tc>, window_params = [{transform_indices = @transform_0, window_bounds = array<i64: 13>}, {transform_indices = @transform_1, window_bounds = array<i64: 2, 8, 128>}, {transform_indices = @transform_2, window_bounds = array<i64: 8, 128>}]} {
    %c0 = arith.constant 0 : index
    %c0_0 = arith.constant 0 : index
    %c0_1 = arith.constant 0 : index
    %0 = vector.load %arg2[%c0, %c0_0, %c0_1] : memref<2x8x128xf32, #tpu.memory_space<vmem>>, vector<1x8x128xf32>
    %1 = vector.shape_cast %0 : vector<1x8x128xf32> to vector<8x128xf32>
    %c1 = arith.constant 1 : index
    %c0_2 = arith.constant 0 : index
    %c0_3 = arith.constant 0 : index
    %2 = vector.load %arg2[%c1, %c0_2, %c0_3] : memref<2x8x128xf32, #tpu.memory_space<vmem>>, vector<1x8x128xf32>
    %3 = vector.shape_cast %2 : vector<1x8x128xf32> to vector<8x128xf32>
    %c0_4 = arith.constant 0 : index
    %4 = memref.load %arg1[%c0_4] : memref<13xf32, #tpu.memory_space<smem>>
    %5 = vector.broadcast %4 : f32 to vector<8x128xf32>
    %6 = arith.mulf %1, %5 : vector<8x128xf32>
    %c1_5 = arith.constant 1 : index
    %7 = memref.load %arg1[%c1_5] : memref<13xf32, #tpu.memory_space<smem>>
    %8 = vector.broadcast %7 : f32 to vector<8x128xf32>
    %9 = arith.mulf %3, %8 : vector<8x128xf32>
    %10 = arith.addf %6, %9 : vector<8x128xf32>
    %c6 = arith.constant 6 : index
    %11 = memref.load %arg1[%c6] : memref<13xf32, #tpu.memory_space<smem>>
    %12 = vector.broadcast %11 : f32 to vector<8x128xf32>
    %13 = arith.addf %10, %12 : vector<8x128xf32>
    %cst = arith.constant 0.000000e+00 : f32
    %14 = vector.broadcast %cst : f32 to vector<8x128xf32>
    %15 = arith.maximumf %13, %14 : vector<8x128xf32>
    %c9 = arith.constant 9 : index
    %16 = memref.load %arg1[%c9] : memref<13xf32, #tpu.memory_space<smem>>
    %17 = vector.broadcast %16 : f32 to vector<8x128xf32>
    %18 = arith.mulf %15, %17 : vector<8x128xf32>
    %c2 = arith.constant 2 : index
    %19 = memref.load %arg1[%c2] : memref<13xf32, #tpu.memory_space<smem>>
    %20 = vector.broadcast %19 : f32 to vector<8x128xf32>
    %21 = arith.mulf %1, %20 : vector<8x128xf32>
    %c3 = arith.constant 3 : index
    %22 = memref.load %arg1[%c3] : memref<13xf32, #tpu.memory_space<smem>>
    %23 = vector.broadcast %22 : f32 to vector<8x128xf32>
    %24 = arith.mulf %3, %23 : vector<8x128xf32>
    %25 = arith.addf %21, %24 : vector<8x128xf32>
    %c7 = arith.constant 7 : index
    %26 = memref.load %arg1[%c7] : memref<13xf32, #tpu.memory_space<smem>>
    %27 = vector.broadcast %26 : f32 to vector<8x128xf32>
    %28 = arith.addf %25, %27 : vector<8x128xf32>
    %cst_6 = arith.constant 0.000000e+00 : f32
    %29 = vector.broadcast %cst_6 : f32 to vector<8x128xf32>
    %30 = arith.maximumf %28, %29 : vector<8x128xf32>
    %c10 = arith.constant 10 : index
    %31 = memref.load %arg1[%c10] : memref<13xf32, #tpu.memory_space<smem>>
    %32 = vector.broadcast %31 : f32 to vector<8x128xf32>
    %33 = arith.mulf %30, %32 : vector<8x128xf32>
    %34 = arith.addf %18, %33 : vector<8x128xf32>
    %c4 = arith.constant 4 : index
    %35 = memref.load %arg1[%c4] : memref<13xf32, #tpu.memory_space<smem>>
    %36 = vector.broadcast %35 : f32 to vector<8x128xf32>
    %37 = arith.mulf %1, %36 : vector<8x128xf32>
    %c5 = arith.constant 5 : index
    %38 = memref.load %arg1[%c5] : memref<13xf32, #tpu.memory_space<smem>>
    %39 = vector.broadcast %38 : f32 to vector<8x128xf32>
    %40 = arith.mulf %3, %39 : vector<8x128xf32>
    %41 = arith.addf %37, %40 : vector<8x128xf32>
    %c8 = arith.constant 8 : index
    %42 = memref.load %arg1[%c8] : memref<13xf32, #tpu.memory_space<smem>>
    %43 = vector.broadcast %42 : f32 to vector<8x128xf32>
    %44 = arith.addf %41, %43 : vector<8x128xf32>
    %cst_7 = arith.constant 0.000000e+00 : f32
    %45 = vector.broadcast %cst_7 : f32 to vector<8x128xf32>
    %46 = arith.maximumf %44, %45 : vector<8x128xf32>
    %c11 = arith.constant 11 : index
    %47 = memref.load %arg1[%c11] : memref<13xf32, #tpu.memory_space<smem>>
    %48 = vector.broadcast %47 : f32 to vector<8x128xf32>
    %49 = arith.mulf %46, %48 : vector<8x128xf32>
    %50 = arith.addf %34, %49 : vector<8x128xf32>
    %c12 = arith.constant 12 : index
    %51 = memref.load %arg1[%c12] : memref<13xf32, #tpu.memory_space<smem>>
    %52 = vector.broadcast %51 : f32 to vector<8x128xf32>
    %53 = arith.addf %50, %52 : vector<8x128xf32>
    %c0_8 = arith.constant 0 : index
    %c0_9 = arith.constant 0 : index
    %54 = vector.load %arg3[%c0_8, %c0_9] : memref<8x128xf32, #tpu.memory_space<vmem>>, vector<8x128xf32>
    tpu.vector_store %arg3[%c0_8, %c0_9], %53 {strides = array<i32>} : memref<8x128xf32, #tpu.memory_space<vmem>>, vector<8x128xf32>,
    return
  }
  func.func @transform_0(%arg0: i32) -> i32 {
    %c0_i32 = arith.constant 0 : i32
    %c0_i32_0 = arith.constant 0 : i32
    return %c0_i32 : i32
  }
  func.func @transform_1(%arg0: i32) -> (i32, i32, i32) {
    %c0_i32 = arith.constant 0 : i32
    %c0_i32_0 = arith.constant 0 : i32
    %c0_i32_1 = arith.constant 0 : i32
    return %c0_i32, %arg0, %c0_i32_0 : i32, i32, i32
  }
  func.func @transform_2(%arg0: i32) -> (i32, i32) {
    %c0_i32 = arith.constant 0 : i32
    %c0_i32_0 = arith.constant 0 : i32
    return %arg0, %c0_i32 : i32, i32
  }
}

</mosaic_0001>

<bundles_post_ra>
// kernel: simplenet_forward.1
= control target key start
LH: loop header
LB: loop body
LE: loop exit
PB: predicated region body
PF: predicated region fallthrough
CT: control target
= control target key end

     0   :  { %7 = vsyncpa [#allocation3], 0  ;;  %s139_s0 = inlined_call_operand.vmem [shape: f32[13], index: 0, kind: input, shape index: {}]   ;;  %s140_s1 = inlined_call_operand.vmem [shape: f32[2,8,128], index: 1, kind: input, shape index: {}]   ;;  %s141_s2 = inlined_call_operand.vmem [shape: f32[8,128], index: 2, kind: output, shape index: {}]  }
   0x1   :  { %s14_s11 = sshll.u32 %s139_s0, 4  ;;  %s15_s11 = int_to_ptr.vmem [resolvable:$true] %s14_s11 }
   0x2   :  { %s94_s12 = scalar_lea.vmem %s15_s11, 16  ;;  %p99_p1 = scmp.lt.s32.totalorder %s15_s11, %s15_s11 }
   0x3   :  { %p95_p0 = scmp.ne.s32.totalorder %s15_s11, %s94_s12  ;;  %p100_p2 = scmp.lt.s32.totalorder %s94_s12, %s94_s12 }
   0x5   :  { %p101_p3 = por %p100_p2, %p99_p1 }
   0x7   :  { %p102_p4 = pnand %p101_p3, %p95_p0 }
   0x9   :  { %105 = shalt.err (!%p102_p4)
}
   0xa   :  { %s108_s13 = smov [#allocation2]  }
   0xb   :  { %17 = dma.vmem_to_smem %s15_s11, 16, %s108_s13, [#allocation3]  }
   0xc   :  { %106 = dma.done.wait [#allocation3], 16  }
   0xd   :  { %107 = vsyncadd [#allocation3], 4294967280 }
   0xe   :  { %23 = sfence }
   0xf   :  { %s27_s14 = sld [smem:[#allocation2]]  ;;  %s81_s15 = sld [smem:[#allocation2 + $0x1]]  ;;  %v24_v0 = vld [vmem:[%s140_s1] sm:$0xff]  ;;  %v80_v1 = vld [vmem:[%s140_s1 + $0x8] sm:$0xff] }
  0x10   :  { %s82_s16 = sld [smem:[#allocation2 + $0x6]]  ;;  %s84_s17 = sld [smem:[#allocation2 + $0x2]] }
  0x11   :  { %s85_s18 = sld [smem:[#allocation2 + $0x3]]  ;;  %s127_s19 = sld [smem:[#allocation2 + $0x9]] }
  0x12   :  { %s86_s0 = sld [smem:[#allocation2 + $0x7]]  ;;  %s88_s24 = sld [smem:[#allocation2 + $0x4]] }
  0x13   :  { %s89_s25 = sld [smem:[#allocation2 + $0x5]]  ;;  %s90_s26 = sld [smem:[#allocation2 + $0x8]] }
  0x14   :  { %s87_s27 = sld [smem:[#allocation2 + $0xa]]  ;;  %s91_s28 = sld [smem:[#allocation2 + $0xb]] }
  0x15   :  { %v28_v2 = vstv %s27_s14  ;;  %v31_v3 = vstv %s81_s15  ;;  %s92_s1 = sld [smem:[#allocation2 + $0xc]] }
  0x16   :  { %v29_v4 = vmul.f32 %v28_v2, %v24_v0  ;;  %v32_v5 = vmul.f32 %v80_v1, %v31_v3  ;;  %v35_v6 = vstv %s82_s16  ;;  %v42_v7 = vstv %s84_s17 }
  0x17   :  { %v45_v8 = vstv %s85_s18  ;;  %v43_v10 = vmul.f32 %v42_v7, %v24_v0  ;;  %v39_v19 = vstv %s127_s19 }
  0x18   :  { %v33_v9 = vadd.f32 %v32_v5, %v29_v4  ;;  %v46_v11 = vmul.f32 %v80_v1, %v45_v8  ;;  %v49_v12 = vstv %s86_s0  ;;  %v57_v13 = vstv %s88_s24 }
  0x19   :  { %v60_v14 = vstv %s89_s25  ;;  %v58_v17 = vmul.f32 %v57_v13, %v24_v0  ;;  %v64_v20 = vstv %s90_s26 }
  0x1a   :  { %v36_v15 = vadd.f32 %v35_v6, %v33_v9  ;;  %v47_v16 = vadd.f32 %v46_v11, %v43_v10  ;;  %v61_v18 = vmul.f32 %v80_v1, %v60_v14  ;;  %v53_v24 = vstv %s87_s27 }
  0x1b   :  { %v68_v28 = vstv %s91_s28  ;;  %v72_v33 = vstv %s92_s1 }
  0x1c   :  { %v37_v21 = vmax.f32 %v36_v15, 0.0  ;;  %v50_v22 = vadd.f32 %v49_v12, %v47_v16  ;;  %v62_v23 = vadd.f32 %v61_v18, %v58_v17 }
  0x1e   :  { %v40_v25 = vmul.f32 %v39_v19, %v37_v21  ;;  %v51_v26 = vmax.f32 %v50_v22, 0.0  ;;  %v65_v27 = vadd.f32 %v64_v20, %v62_v23 }
  0x20   :  { %v54_v29 = vmul.f32 %v53_v24, %v51_v26  ;;  %v66_v30 = vmax.f32 %v65_v27, 0.0 }
  0x22   :  { %v55_v31 = vadd.f32 %v54_v29, %v40_v25  ;;  %v69_v32 = vmul.f32 %v68_v28, %v66_v30 }
  0x24   :  { %v70_v34 = vadd.f32 %v69_v32, %v55_v31 }
  0x26   :  { %v73_v35 = vadd.f32 %v72_v33, %v70_v34 }
  0x28   :  { %74 = vst [vmem:[%s141_s2] sm:$0xff] %v73_v35 }
  0x29   :  { %79 = vsyncpa [#allocation3], 1 }

</bundles_post_ra>
